<compile_context>
chip_gen: v6e
topology: v6e:2x2x1
jax: 0.10.0
libtpu: 0.0.40
codegen_flags: <defaults>
</compile_context>

<pallas_src>
import math
from functools import partial

import jax
import jax.numpy as jnp
from jax.experimental import pallas as pl
from jax.experimental.pallas import tpu as pltpu


def _round_up(x, m):
    return (x + m - 1) // m * m


def _pick_tile(dim, pref, granule):
    """Largest t <= pref that divides `dim` and is a multiple of `granule`.

    `dim` is always a multiple of `granule` here, so `granule` is a valid
    fallback and the loop terminates.
    """
    pref = max(granule, min(pref, dim))
    t = (pref // granule) * granule
    while t > granule and dim % t != 0:
        t -= granule
    return t


# ---------------------------------------------------------------------------
# Fused per-layer kernel:  out = relu(adj @ (x @ W) + b)
# grid = (M//tm, N//tn, K//tk), reduction axis last.
# ---------------------------------------------------------------------------
def _gcn_layer_kernel(adj_ref, x_ref, w_ref, b_ref, o_ref, acc_ref, *, apply_relu):
    @pl.when(pl.program_id(2) == 0)
    def _init():
        acc_ref[...] = jnp.zeros_like(acc_ref)

    # support k-slab computed on the fly; the adj matmul is HBM-bound, so these
    # extra MXU FLOPs ride on slack and the HBM round trip of `support` is gone.
    support = jnp.dot(x_ref[...], w_ref[...], preferred_element_type=jnp.float32)
    acc_ref[...] += jnp.dot(adj_ref[...], support.astype(adj_ref.dtype),
                            preferred_element_type=jnp.float32)

    @pl.when(pl.program_id(2) == pl.num_programs(2) - 1)
    def _finalize():
        out = acc_ref[...] + b_ref[...]            # (tm, tn) + (1, tn)
        if apply_relu:
            out = jnp.maximum(out, 0.0)
        o_ref[...] = out.astype(o_ref.dtype)


def _gcn_layer(adj_p, x_p, w_p, b_p, *, out_dtype, apply_relu=True,
               tm_pref=256, tn_pref=512, tk_pref=512,
               vmem_budget=24 * 1024 * 1024):
    """One fused GCN layer on pre-padded, pre-cast (bf16) operands."""
    Mp, Kp = adj_p.shape
    Kp2, Fp = x_p.shape
    Fp2, Np = w_p.shape
    assert Kp == Kp2 and Fp == Fp2, (adj_p.shape, x_p.shape, w_p.shape)

    out_bytes = jnp.dtype(out_dtype).itemsize
    in_bytes = jnp.dtype(adj_p.dtype).itemsize

    # Keep >=2 grid points along i when possible (v7x has 2 TensorCores).
    tm = _pick_tile(Mp, min(tm_pref, Mp if Mp < 256 else Mp // 2), 16)
    tn = _pick_tile(Np, tn_pref, 128)
    tk = _pick_tile(Kp, tk_pref, 128)

    def est(tm_, tk_, tn_):
        return (2 * in_bytes * (tm_ * tk_ + tk_ * Fp + Fp * tn_)   # adj, x, W (dbl-buf)
                + 2 * 4 * tn_                                       # bias (f32)
                + 2 * out_bytes * tm_ * tn_                         # out (dbl-buf)
                + 4 * tm_ * tn_)                                    # f32 accumulator

    while est(tm, tk, tn) > vmem_budget and tk > 128:
        tk = _pick_tile(Kp, max(tk // 2, 128), 128)
    while est(tm, tk, tn) > vmem_budget and tm > 16:
        tm = _pick_tile(Mp, max(tm // 2, 16), 16)
    while est(tm, tk, tn) > vmem_budget and tn > 128:
        tn = _pick_tile(Np, max(tn // 2, 128), 128)

    grid = (Mp // tm, Np // tn, Kp // tk)

    return pl.pallas_call(
        partial(_gcn_layer_kernel, apply_relu=apply_relu),
        out_shape=jax.ShapeDtypeStruct((Mp, Np), out_dtype),
        grid_spec=pltpu.PrefetchScalarGridSpec(
            num_scalar_prefetch=0,
            grid=grid,
            in_specs=[
                pl.BlockSpec((tm, tk), lambda i, j, k: (i, k)),   # adj tile
                pl.BlockSpec((tk, Fp), lambda i, j, k: (k, 0)),   # x k-slab (full feat dim)
                pl.BlockSpec((Fp, tn), lambda i, j, k: (0, j)),   # W column block (resident)
                pl.BlockSpec((1, tn), lambda i, j, k: (0, j)),    # bias row
            ],
            out_specs=pl.BlockSpec((tm, tn), lambda i, j, k: (i, j)),
            scratch_shapes=[pltpu.VMEM((tm, tn), jnp.float32)]),
        compiler_params=pltpu.CompilerParams(
            dimension_semantics=("parallel", "parallel", "arbitrary"),
            vmem_limit_bytes=32 * 1024 * 1024),
    )(adj_p, x_p, w_p, b_p)


# ---------------------------------------------------------------------------
# Fully-fused two-layer kernel for tiny graphs (everything resident in VMEM).
# ---------------------------------------------------------------------------
def _gcn_tiny_kernel(adj_ref, x_ref, w1_ref, b1_ref, w2_ref, b2_ref, o_ref):
    cd = adj_ref.dtype
    s1 = jnp.dot(x_ref[...], w1_ref[...], preferred_element_type=jnp.float32)
    h = jnp.dot(adj_ref[...], s1.astype(cd), preferred_element_type=jnp.float32)
    h = jnp.maximum(h + b1_ref[...], 0.0)
    s2 = jnp.dot(h.astype(cd), w2_ref[...], preferred_element_type=jnp.float32)
    out = jnp.dot(adj_ref[...], s2.astype(cd), preferred_element_type=jnp.float32)
    out = jnp.maximum(out + b2_ref[...], 0.0)
    o_ref[...] = out.astype(o_ref.dtype)


def _gcn_tiny(adj_p, x_p, w1_p, b1_p, w2_p, b2_p, *, out_dtype):
    Mp = adj_p.shape[0]
    Op = w2_p.shape[1]
    vspec = pl.BlockSpec(memory_space=pltpu.MemorySpace.VMEM)
    return pl.pallas_call(
        _gcn_tiny_kernel,
        out_shape=jax.ShapeDtypeStruct((Mp, Op), out_dtype),
        in_specs=[vspec] * 6,
        out_specs=vspec,
        compiler_params=pltpu.CompilerParams(
            vmem_limit_bytes=32 * 1024 * 1024),
    )(adj_p, x_p, w1_p, b1_p, w2_p, b2_p)


# ---------------------------------------------------------------------------
# GCN forward pass.
# ---------------------------------------------------------------------------
def gcn_forward(x, adj, params, *, dropout=0.0, training=False, rng=None,
                force_tiled=False, compute_dtype=jnp.bfloat16):
    """Pallas equivalent of GCN.forward(x, adj).

    x:   [n_nodes, n_feat] float32
    adj: [n_nodes, n_nodes] float32 (normalized adjacency)
    params: (w1, b1, w2, b2)
    """
    w1, b1, w2, b2 = params
    n_nodes, n_feat = x.shape
    n_hid = w1.shape[1]
    n_out = w2.shape[1]
    if b1 is None:
        b1 = jnp.zeros((n_hid,), jnp.float32)
    if b2 is None:
        b2 = jnp.zeros((n_out,), jnp.float32)

    # Pad once to layout granules (n_nodes appears as both lane and sublane dim
    # -> pad to 128 so adj stays square and h needs no re-pad between layers),
    # cast MXU inputs to bf16 once.  Only the final output is sliced.
    Npad = _round_up(n_nodes, 128)
    Fp = _round_up(n_feat, 128)
    Hp = _round_up(n_hid, 128)
    Op = _round_up(n_out, 128)

    adj_p = jnp.pad(adj, ((0, Npad - n_nodes), (0, Npad - n_nodes))).astype(compute_dtype)
    x_p = jnp.pad(x, ((0, Npad - n_nodes), (0, Fp - n_feat))).astype(compute_dtype)
    w1_p = jnp.pad(w1, ((0, Fp - n_feat), (0, Hp - n_hid))).astype(compute_dtype)
    w2_p = jnp.pad(w2, ((0, Hp - n_hid), (0, Op - n_out))).astype(compute_dtype)
    b1_p = jnp.pad(b1, (0, Hp - n_hid)).reshape(1, Hp).astype(jnp.float32)
    b2_p = jnp.pad(b2, (0, Op - n_out)).reshape(1, Op).astype(jnp.float32)

    use_dropout = training and dropout > 0.0
    if use_dropout and rng is None:
        raise ValueError("training with dropout > 0 requires an rng key")

    tiny_ok = (not force_tiled and not use_dropout
               and Npad <= 256 and Fp <= 512 and Hp <= 512 and Op <= 512)

    if tiny_ok:
        # Single launch; all operands + intermediates resident in VMEM.
        out_p = _gcn_tiny(adj_p, x_p, w1_p, b1_p, w2_p, b2_p, out_dtype=jnp.float32)
    else:
        # layer 1: relu(adj @ (x @ W1) + b1), bf16 intermediate, stays padded.
        h_p = _gcn_layer(adj_p, x_p, w1_p, b1_p, out_dtype=compute_dtype)

        if use_dropout:
            # TODO(synk): fuse dropout into the layer-1 epilogue with
            # pltpu.prng_seed / pltpu.prng_random_bits to avoid this HBM pass.
            keep = 1.0 - dropout
            mask = jax.random.bernoulli(rng, keep, h_p.shape)
            h_p = jnp.where(mask, h_p / jnp.asarray(keep, h_p.dtype),
                            jnp.zeros_like(h_p))

        # layer 2: relu(adj @ (h @ W2) + b2), final output in f32.
        out_p = _gcn_layer(adj_p, h_p, w2_p, b2_p, out_dtype=jnp.float32)

    return out_p[:n_nodes, :n_out]


def init_gcn_params(key, n_feat, n_hid, n_out, bias=True):
    """Deterministic init matching GraphConvolution.reset_parameters()."""
    k1, k2, k3, k4 = jax.random.split(key, 4)

    def gc_init(kw, kb, fin, fout):
        stdv = 1.0 / math.sqrt(fout)
        w = jax.random.uniform(kw, (fin, fout), jnp.float32, -stdv, stdv)
        b = (jax.random.uniform(kb, (fout,), jnp.float32, -stdv, stdv)
             if bias else None)
        return w, b

    w1, b1 = gc_init(k1, k2, n_feat, n_hid)
    w2, b2 = gc_init(k3, k4, n_hid, n_out)
    return w1, b1, w2, b2


if __name__ == "__main__":
    key = jax.random.PRNGKey(0)
    k_x, k_adj, k_p = jax.random.split(key, 3)

    n_nodes, n_feat, n_hid, n_out = 16, 32, 64, 32
    dropout_p = 0.5

    x = jax.random.normal(k_x, (n_nodes, n_feat), dtype=jnp.float32)

    # Row-normalized adjacency with self-loops.
    a = (jax.random.uniform(k_adj, (n_nodes, n_nodes)) < 0.3).astype(jnp.float32)
    a = jnp.maximum(a, a.T) + jnp.eye(n_nodes, dtype=jnp.float32)
    adj = a / jnp.sum(a, axis=1, keepdims=True)

    params = init_gcn_params(k_p, n_feat, n_hid, n_out, bias=True)

    # Plain-JAX f32 reference (eval mode: dropout is identity).
    w1, b1, w2, b2 = params
    h_ref = jnp.maximum(adj @ (x @ w1) + b1, 0.0)
    ref = jnp.maximum(adj @ (h_ref @ w2) + b2, 0.0)

    # Path 1: fully-fused tiny-graph kernel (single launch).
    out_tiny = gcn_forward(x, adj, params, dropout=dropout_p, training=False)
    out_tiny = jax.block_until_ready(out_tiny)

    # Path 2: tiled per-layer fused kernels (the large-graph path).
    out_tiled = gcn_forward(x, adj, params, dropout=dropout_p, training=False,
                            force_tiled=True)
    out_tiled = jax.block_until_ready(out_tiled)

    assert out_tiny.shape == ref.shape, (out_tiny.shape, ref.shape)
    assert out_tiled.shape == ref.shape, (out_tiled.shape, ref.shape)
    # Loose tolerance: kernels use bf16 MXU inputs with f32 accumulation.
    assert jnp.allclose(out_tiny, ref, atol=3e-2, rtol=3e-2), "tiny path mismatch"
    assert jnp.allclose(out_tiled, ref, atol=3e-2, rtol=3e-2), "tiled path mismatch"

    print("KERNEL_OK")
</pallas_src>

<mosaic_0001>
module attributes {stable_mosaic.version = 11 : i64} {
  func.func @_gcn_tiny_kernel(%arg0: memref<128x128xbf16, #tpu.memory_space<vmem>>, %arg1: memref<128x128xbf16, #tpu.memory_space<vmem>>, %arg2: memref<128x128xbf16, #tpu.memory_space<vmem>>, %arg3: memref<1x128xf32, #tpu.memory_space<vmem>>, %arg4: memref<128x128xbf16, #tpu.memory_space<vmem>>, %arg5: memref<1x128xf32, #tpu.memory_space<vmem>>, %arg6: memref<128x128xf32, #tpu.memory_space<vmem>>) attributes {dimension_semantics = [], scalar_prefetch = 0 : i64, scratch_operands = 0 : i64, tpu.core_type = #tpu.core_type<tc>} {
    %c0 = arith.constant 0 : index
    %c0_0 = arith.constant 0 : index
    %0 = vector.load %arg1[%c0, %c0_0] : memref<128x128xbf16, #tpu.memory_space<vmem>>, vector<128x128xbf16>
    %c0_1 = arith.constant 0 : index
    %c0_2 = arith.constant 0 : index
    %1 = vector.load %arg2[%c0_1, %c0_2] : memref<128x128xbf16, #tpu.memory_space<vmem>>, vector<128x128xbf16>
    %cst = arith.constant dense<0.000000e+00> : vector<128x128xf32>
    %2 = tpu.matmul %0, %1, %cst {dimension_numbers = #tpu.dot_dimension_numbers<[1], [0], [0], [1], [0, 0, 1, 1], [], []>} : vector<128x128xbf16>, vector<128x128xbf16>, vector<128x128xf32> -> vector<128x128xf32>
    %c0_3 = arith.constant 0 : index
    %c0_4 = arith.constant 0 : index
    %3 = vector.load %arg0[%c0_3, %c0_4] : memref<128x128xbf16, #tpu.memory_space<vmem>>, vector<128x128xbf16>
    %4 = arith.truncf %2 : vector<128x128xf32> to vector<128x128xbf16>
    %cst_5 = arith.constant dense<0.000000e+00> : vector<128x128xf32>
    %5 = tpu.matmul %3, %4, %cst_5 {dimension_numbers = #tpu.dot_dimension_numbers<[1], [0], [0], [1], [0, 0, 1, 1], [], []>} : vector<128x128xbf16>, vector<128x128xbf16>, vector<128x128xf32> -> vector<128x128xf32>
    %c0_6 = arith.constant 0 : index
    %c0_7 = arith.constant 0 : index
    %6 = vector.load %arg3[%c0_6, %c0_7] : memref<1x128xf32, #tpu.memory_space<vmem>>, vector<1x128xf32>
    %7 = vector.broadcast %6 : vector<1x128xf32> to vector<128x128xf32>
    %8 = arith.addf %5, %7 : vector<128x128xf32>
    %cst_8 = arith.constant 0.000000e+00 : f32
    %9 = vector.broadcast %cst_8 : f32 to vector<128x128xf32>
    %10 = arith.maximumf %8, %9 : vector<128x128xf32>
    %11 = arith.truncf %10 : vector<128x128xf32> to vector<128x128xbf16>
    %c0_9 = arith.constant 0 : index
    %c0_10 = arith.constant 0 : index
    %12 = vector.load %arg4[%c0_9, %c0_10] : memref<128x128xbf16, #tpu.memory_space<vmem>>, vector<128x128xbf16>
    %cst_11 = arith.constant dense<0.000000e+00> : vector<128x128xf32>
    %13 = tpu.matmul %11, %12, %cst_11 {dimension_numbers = #tpu.dot_dimension_numbers<[1], [0], [0], [1], [0, 0, 1, 1], [], []>} : vector<128x128xbf16>, vector<128x128xbf16>, vector<128x128xf32> -> vector<128x128xf32>
    %c0_12 = arith.constant 0 : index
    %c0_13 = arith.constant 0 : index
    %14 = vector.load %arg0[%c0_12, %c0_13] : memref<128x128xbf16, #tpu.memory_space<vmem>>, vector<128x128xbf16>
    %15 = arith.truncf %13 : vector<128x128xf32> to vector<128x128xbf16>
    %cst_14 = arith.constant dense<0.000000e+00> : vector<128x128xf32>
    %16 = tpu.matmul %14, %15, %cst_14 {dimension_numbers = #tpu.dot_dimension_numbers<[1], [0], [0], [1], [0, 0, 1, 1], [], []>} : vector<128x128xbf16>, vector<128x128xbf16>, vector<128x128xf32> -> vector<128x128xf32>
    %c0_15 = arith.constant 0 : index
    %c0_16 = arith.constant 0 : index
    %17 = vector.load %arg5[%c0_15, %c0_16] : memref<1x128xf32, #tpu.memory_space<vmem>>, vector<1x128xf32>
    %18 = vector.broadcast %17 : vector<1x128xf32> to vector<128x128xf32>
    %19 = arith.addf %16, %18 : vector<128x128xf32>
    %cst_17 = arith.constant 0.000000e+00 : f32
    %20 = vector.broadcast %cst_17 : f32 to vector<128x128xf32>
    %21 = arith.maximumf %19, %20 : vector<128x128xf32>
    %c0_18 = arith.constant 0 : index
    %c0_19 = arith.constant 0 : index
    %22 = vector.load %arg6[%c0_18, %c0_19] : memref<128x128xf32, #tpu.memory_space<vmem>>, vector<128x128xf32>
    tpu.vector_store %arg6[%c0_18, %c0_19], %21 {strides = array<i32>} : memref<128x128xf32, #tpu.memory_space<vmem>>, vector<128x128xf32>,
    return
  }
}

</mosaic_0001>

<bundles_post_ra>
// kernel: tpu_custom_call.1
= control target key start
LH: loop header
LB: loop body
LE: loop exit
PB: predicated region body
PF: predicated region fallthrough
CT: control target
= control target key end

     0   :  { %11 = vsyncpa [#allocation3], 0  ;;  %s1331_s0 = inlined_call_operand.hbm [shape: bf16[128,128], index: 0, kind: input, shape index: {}]   ;;  %s1332_s1 = inlined_call_operand.hbm [shape: bf16[128,128], index: 1, kind: input, shape index: {}]   ;;  %s1333_s2 = inlined_call_operand.hbm [shape: bf16[128,128], index: 2, kind: input, shape index: {}]   ;;  %s1334_s3 = inlined_call_operand.vmem [shape: f32[1,128], index: 3, kind: input, shape index: {}]   ;;  %s1335_s4 = inlined_call_operand.hbm [shape: bf16[128,128], index: 4, kind: input, shape index: {}]   ;;  %s1336_s5 = inlined_call_operand.vmem [shape: f32[1,128], index: 5, kind: input, shape index: {}]   ;;  %s1337_s6 = inlined_call_operand.hbm [shape: f32[128,128], index: 6, kind: output, shape index: {}]  }
   0x1   :  { %12 = vsyncpa [#allocation6], 0 }
   0x2   :  { %13 = vsyncpa [#allocation9], 0 }
   0x3   :  { %14 = vsyncpa [#allocation4], 0  ;;  %s1204_s21 = smov [#allocation5]   ;;  %s1205_s23 = smov [#allocation2]  }
   0x4   :  { %s32_s22 = sshll.u32 %s1204_s21, 4  ;;  %s20_s24 = sshll.u32 %s1205_s23, 4  ;;  %s33_s22 = int_to_ptr.vmem [resolvable:$true] %s32_s22  ;;  %s21_s24 = int_to_ptr.vmem [resolvable:$true] %s20_s24 }
   0x5   :  { %s1104_s25 = scalar_lea.vmem %s33_s22, 1024  ;;  %p1109_p1 = scmp.lt.s32.totalorder %s33_s22, %s33_s22 }
   0x6   :  { %p1105_p0 = scmp.ne.s32.totalorder %s33_s22, %s1104_s25  ;;  %p1110_p2 = scmp.lt.s32.totalorder %s1104_s25, %s1104_s25 }
   0x8   :  { %p1111_p3 = por %p1110_p2, %p1109_p1 }
   0xa   :  { %p1112_p4 = pnand %p1111_p3, %p1105_p0 }
   0xc   :  { %1115 = shalt.err (!%p1112_p4)
}
   0xd   :  { %s1206_s26 = smov 64   ;;  %s1207_s27 = smov 4  }
   0xe   :  { %38 = dma.hbm_to_vmem [thread:$0]  %s1332_s1, 1024, %s33_s22, [#allocation6], %s1206_s26, %s1206_s26, %s1207_s27  }
   0xf   :  { %s1124_s30 = scalar_lea.vmem %s21_s24, 1024  ;;  %p1129_p6 = scmp.lt.s32.totalorder %s21_s24, %s21_s24 }
  0x10   :  { %p1125_p5 = scmp.ne.s32.totalorder %s21_s24, %s1124_s30  ;;  %p1130_p7 = scmp.lt.s32.totalorder %s1124_s30, %s1124_s30 }
  0x12   :  { %p1131_p8 = por %p1130_p7, %p1129_p6 }
  0x14   :  { %p1132_p9 = pnand %p1131_p8, %p1125_p5 }
  0x16   :  { %1135 = shalt.err (!%p1132_p9)
}
  0x17   :  { %26 = dma.hbm_to_vmem [thread:$0]  %s1331_s0, 1024, %s21_s24, [#allocation3], %s1206_s26, %s1206_s26, %s1207_s27  }
  0x18   :  { %s1208_s9 = smov [#allocation7]   ;;  %s1209_s11 = smov [#allocation8]  }
  0x19   :  { %s44_s10 = sshll.u32 %s1208_s9, 4  ;;  %s58_s12 = sshll.u32 %s1209_s11, 4  ;;  %s45_s10 = int_to_ptr.vmem [resolvable:$true] %s44_s10  ;;  %s59_s12 = int_to_ptr.vmem [resolvable:$true] %s58_s12 }
  0x1a   :  { %s1144_s1 = scalar_lea.vmem %s45_s10, 1024  ;;  %p1149_p11 = scmp.lt.s32.totalorder %s45_s10, %s45_s10 }
  0x1b   :  { %p1145_p10 = scmp.ne.s32.totalorder %s45_s10, %s1144_s1  ;;  %p1150_p12 = scmp.lt.s32.totalorder %s1144_s1, %s1144_s1 }
  0x1d   :  { %p1151_p13 = por %p1150_p12, %p1149_p11 }
  0x1f   :  { %p1152_p0 = pnand %p1151_p13, %p1145_p10 }
  0x21   :  { %1155 = shalt.err (!%p1152_p0)
}
  0x22   :  { %50 = dma.hbm_to_vmem [thread:$0]  %s1333_s2, 1024, %s45_s10, [#allocation6], %s1206_s26, %s1206_s26, %s1207_s27  }
  0x23   :  { %s1164_s0 = scalar_lea.vmem %s59_s12, 1024  ;;  %p1169_p2 = scmp.lt.s32.totalorder %s59_s12, %s59_s12 }
  0x24   :  { %p1165_p1 = scmp.ne.s32.totalorder %s59_s12, %s1164_s0  ;;  %p1170_p3 = scmp.lt.s32.totalorder %s1164_s0, %s1164_s0 }
  0x26   :  { %p1171_p4 = por %p1170_p3, %p1169_p2 }
  0x28   :  { %p1172_p5 = pnand %p1171_p4, %p1165_p1 }
  0x2a   :  { %1175 = shalt.err (!%p1172_p5)
}
  0x2b   :  { %64 = dma.hbm_to_vmem [thread:$0]  %s1335_s4, 1024, %s59_s12, [#allocation9], %s1206_s26, %s1206_s26, %s1207_s27  }
  0x2c   :  { %1196 = dma.done.wait [#allocation3], 1024  }
  0x2d   :  { %1197 = vsyncadd [#allocation3], 4294966272 }
  0x2e   :  { %1198 = dma.done.wait [#allocation6], 2048  }
  0x2f   :  { %1199 = vsyncadd [#allocation6], 4294965248 }
  0x30   :  { %1200 = dma.done.wait [#allocation9], 1024  }
  0x31   :  { %1201 = vsyncadd [#allocation9], 4294966272  ;;  %v1064_v0 = vld [vmem:[#allocation7 + $0x38] sm:$0xff]   ;;  %v1065_v1 = vld [vmem:[#allocation7 + $0x30] sm:$0xff]  }
  0x32   :  { %927 = vmatprep.subr.bf16.mxu0 %v1064_v0  ;;  %v1066_v2 = vld [vmem:[#allocation7 + $0x28] sm:$0xff]   ;;  %v1067_v3 = vld [vmem:[#allocation7 + $0x20] sm:$0xff]   ;;  %v1068_v5 = vld [vmem:[#allocation7 + $0x18] sm:$0xff]  }
  0x33   :  { %928 = vmatpush3.bf16.msra.mxu0 %v1064_v0  ;;  %v1072_v4 = vld [vmem:[#allocation5] sm:$0xff]   ;;  %v1069_v6 = vld [vmem:[#allocation7 + $0x10] sm:$0xff]   ;;  %v1070_v7 = vld [vmem:[#allocation7 + $0x8] sm:$0xff]  }
  0x34   :  { %929 = vmatprep.subr.bf16.mxu0 %v1065_v1  ;;  %943 = vmatprep.mubr.bf16.mxu0 %v1072_v4  ;;  %v1071_v8 = vld [vmem:[#allocation7] sm:$0xff]   ;;  %v1073_v9 = vld [vmem:[#allocation5 + $0x8] sm:$0xff]   ;;  %v1074_v10 = vld [vmem:[#allocation5 + $0x10] sm:$0xff]  }
  0x35   :  { %v1075_v11 = vld [vmem:[#allocation5 + $0x18] sm:$0xff]   ;;  %v1076_v12 = vld [vmem:[#allocation5 + $0x20] sm:$0xff]   ;;  %v1077_v13 = vld [vmem:[#allocation5 + $0x28] sm:$0xff]  }
  0x36   :  { %v1078_v14 = vld [vmem:[#allocation5 + $0x30] sm:$0xff]   ;;  %v1079_v15 = vld [vmem:[#allocation5 + $0x38] sm:$0xff]   ;;  %v1272_v16 = vld [vmem:[#allocation2] sm:$0xff]  }
  0x37   :  { %930 = vmatpush3.bf16.msra.mxu0 %v1065_v1  ;;  %975 = vmatprep.mubr.bf16.mxu1 %v1272_v16  ;;  %v1088_v17 = vld [vmem:[#allocation8 + $0x38] sm:$0xff]   ;;  %v1089_v18 = vld [vmem:[#allocation8 + $0x30] sm:$0xff]   ;;  %v1090_v19 = vld [vmem:[#allocation8 + $0x28] sm:$0xff]  }
  0x38   :  { %931 = vmatprep.subr.bf16.mxu0 %v1066_v2  ;;  %v1091_v20 = vld [vmem:[#allocation8 + $0x20] sm:$0xff]   ;;  %v1092_v21 = vld [vmem:[#allocation8 + $0x18] sm:$0xff]   ;;  %v1275_v46 = vld [vmem:[#allocation2 + $0x8] sm:$0xff]  }
  0x39   :  { %v1277_v47 = vld [vmem:[#allocation2 + $0x10] sm:$0xff]   ;;  %v1281_v48 = vld [vmem:[#allocation2 + $0x18] sm:$0xff]   ;;  %v1283_v49 = vld [vmem:[#allocation2 + $0x20] sm:$0xff]  }
  0x3a   :  { %v1287_v50 = vld [vmem:[#allocation2 + $0x28] sm:$0xff]   ;;  %v1289_v51 = vld [vmem:[#allocation2 + $0x30] sm:$0xff]   ;;  %v1293_v52 = vld [vmem:[#allocation2 + $0x38] sm:$0xff]  }
  0x3b   :  { %932 = vmatpush3.bf16.msra.mxu0 %v1066_v2  ;;  %v1093_v53 = vld [vmem:[#allocation8 + $0x10] sm:$0xff]   ;;  %v1094_v54 = vld [vmem:[#allocation8 + $0x8] sm:$0xff]   ;;  %v1095_v55 = vld [vmem:[#allocation8] sm:$0xff]  }
  0x3c   :  { %933 = vmatprep.subr.bf16.mxu0 %v1067_v3  ;;  %v845_v58 = vld [vmem:[%s1334_s3] ss:$0 sm:$0xff] }
  0x3f   :  { %934 = vmatpush3.bf16.msra.mxu0 %v1067_v3 }
  0x40   :  { %935 = vmatprep.subr.bf16.mxu0 %v1068_v5 }
  0x43   :  { %936 = vmatpush3.bf16.msra.mxu0 %v1068_v5 }
  0x44   :  { %937 = vmatprep.subr.bf16.mxu0 %v1069_v6 }
  0x47   :  { %938 = vmatpush3.bf16.msra.mxu0 %v1069_v6 }
  0x48   :  { %939 = vmatprep.subr.bf16.mxu0 %v1070_v7 }
  0x4b   :  { %940 = vmatpush3.bf16.msra.mxu0 %v1070_v7 }
  0x4c   :  { %941 = vmatprep.subr.bf16.mxu0 %v1071_v8 }
  0x4f   :  { %942 = vmatpush3.bf16.msra.mxu0 %v1071_v8 }
  0x50   :  { %991 = vmatprep.subr.bf16.mxu0 %v1088_v17 }
  0x52   :  { %944 = vmatmul.mubr.bf16.vlgmr.msra.gmra.mxu0 %v1073_v9 }
  0x53   :  { %947 = vmatprep.mubr.bf16.mxu0 %v1074_v10  ;;  %992 = vmatpush3.bf16.msra.mxu0 %v1088_v17 }
  0x54   :  { %993 = vmatprep.subr.bf16.mxu0 %v1089_v18 }
  0x57   :  { %994 = vmatpush3.bf16.msra.mxu0 %v1089_v18 }
  0x58   :  { %995 = vmatprep.subr.bf16.mxu0 %v1090_v19 }
  0x5a   :  { %948 = vmatmul.mubr.bf16.gmra.mxu0 %v1075_v11 }
  0x5b   :  { %951 = vmatprep.mubr.bf16.mxu0 %v1076_v12  ;;  %996 = vmatpush3.bf16.msra.mxu0 %v1090_v19 }
  0x5c   :  { %997 = vmatprep.subr.bf16.mxu0 %v1091_v20 }
  0x5f   :  { %998 = vmatpush3.bf16.msra.mxu0 %v1091_v20 }
  0x60   :  { %999 = vmatprep.subr.bf16.mxu0 %v1092_v21 }
  0x62   :  { %952 = vmatmul.mubr.bf16.gmra.mxu0 %v1077_v13 }
  0x63   :  { %955 = vmatprep.mubr.bf16.mxu0 %v1078_v14  ;;  %1000 = vmatpush3.bf16.msra.mxu0 %v1092_v21 }
  0x64   :  { %1001 = vmatprep.subr.bf16.mxu0 %v1093_v53 }
  0x67   :  { %1002 = vmatpush3.bf16.msra.mxu0 %v1093_v53 }
  0x68   :  { %1003 = vmatprep.subr.bf16.mxu0 %v1094_v54 }
  0x6a   :  { %956 = vmatmul.mubr.bf16.gmra.mxu0 %v1079_v15 }
  0x6b   :  { %1004 = vmatpush3.bf16.msra.mxu0 %v1094_v54 }
  0x6c   :  { %1005 = vmatprep.subr.bf16.mxu0 %v1095_v55 }
  0x6f   :  { %1006 = vmatpush3.bf16.msra.mxu0 %v1095_v55 }
 0x112   :  { %v945_v22 = vpop.f32.mrf.mxu0 }
 0x114   :  { %v242_v23 = vpop.f32.mrf.mxu0 }
 0x116   :  { %v946_v24 = vpop.f32.mrf.mxu0 }
 0x117   :  { %v322_v44 = vpack.c.bf16 %v946_v24, %v945_v22 }
 0x118   :  { %v245_v25 = vpop.f32.mrf.mxu0 }
 0x119   :  { %v321_v45 = vpack.c.bf16 %v245_v25, %v242_v23 }
 0x11a   :  { %v949_v26 = vpop.f32.mrf.mxu0 }
 0x11c   :  { %v258_v27 = vpop.f32.mrf.mxu0 }
 0x11e   :  { %v950_v28 = vpop.f32.mrf.mxu0 }
 0x11f   :  { %v324_v42 = vpack.c.bf16 %v950_v28, %v949_v26 }
 0x120   :  { %v261_v29 = vpop.f32.mrf.mxu0 }
 0x121   :  { %v323_v43 = vpack.c.bf16 %v261_v29, %v258_v27 }
 0x122   :  { %v953_v30 = vpop.f32.mrf.mxu0 }
 0x124   :  { %v274_v31 = vpop.f32.mrf.mxu0 }
 0x126   :  { %v954_v32 = vpop.f32.mrf.mxu0 }
 0x127   :  { %v326_v40 = vpack.c.bf16 %v954_v32, %v953_v30 }
 0x128   :  { %v277_v33 = vpop.f32.mrf.mxu0 }
 0x129   :  { %v325_v41 = vpack.c.bf16 %v277_v33, %v274_v31 }
 0x12a   :  { %v957_v34 = vpop.f32.mrf.mxu0 }
 0x12c   :  { %v290_v35 = vpop.f32.mrf.mxu0 }
 0x12e   :  { %v958_v36 = vpop.f32.mrf.mxu0 }
 0x12f   :  { %v328_v37 = vpack.c.bf16 %v958_v36, %v957_v34 }
 0x130   :  { %v293_v38 = vpop.f32.mrf.mxu0 }
 0x131   :  { %v327_v39 = vpack.c.bf16 %v293_v38, %v290_v35  ;;  %959 = vmatprep.subr.bf16.mxu1 %v328_v37 }
 0x132   :  { %960 = vmatpush3.bf16.msra.mxu1 %v328_v37 }
 0x133   :  { %961 = vmatprep.subr.bf16.mxu1 %v327_v39 }
 0x136   :  { %962 = vmatpush3.bf16.msra.mxu1 %v327_v39 }
 0x137   :  { %963 = vmatprep.subr.bf16.mxu1 %v326_v40 }
 0x13a   :  { %964 = vmatpush3.bf16.msra.mxu1 %v326_v40 }
 0x13b   :  { %965 = vmatprep.subr.bf16.mxu1 %v325_v41 }
 0x13e   :  { %966 = vmatpush3.bf16.msra.mxu1 %v325_v41 }
 0x13f   :  { %967 = vmatprep.subr.bf16.mxu1 %v324_v42 }
 0x142   :  { %968 = vmatpush3.bf16.msra.mxu1 %v324_v42 }
 0x143   :  { %969 = vmatprep.subr.bf16.mxu1 %v323_v43 }
 0x146   :  { %970 = vmatpush3.bf16.msra.mxu1 %v323_v43 }
 0x147   :  { %971 = vmatprep.subr.bf16.mxu1 %v322_v44 }
 0x14a   :  { %972 = vmatpush3.bf16.msra.mxu1 %v322_v44 }
 0x14b   :  { %973 = vmatprep.subr.bf16.mxu1 %v321_v45 }
 0x14e   :  { %974 = vmatpush3.bf16.msra.mxu1 %v321_v45 }
 0x151   :  { %976 = vmatmul.mubr.bf16.vlgmr.msra.gmra.mxu1 %v1275_v46 }
 0x152   :  { %979 = vmatprep.mubr.bf16.mxu1 %v1277_v47 }
 0x159   :  { %980 = vmatmul.mubr.bf16.gmra.mxu1 %v1281_v48 }
 0x15a   :  { %983 = vmatprep.mubr.bf16.mxu1 %v1283_v49 }
 0x161   :  { %984 = vmatmul.mubr.bf16.gmra.mxu1 %v1287_v50 }
 0x162   :  { %987 = vmatprep.mubr.bf16.mxu1 %v1289_v51 }
 0x169   :  { %988 = vmatmul.mubr.bf16.gmra.mxu1 %v1293_v52 }
 0x16a   :  { %1039 = vmatprep.mubr.bf16.mxu1 %v1272_v16 }
 0x211   :  { %v977_v56 = vpop.f32.mrf.mxu1 }
 0x212   :  { %v427_v62 = vadd.f32 %v977_v56, %v845_v58 }
 0x213   :  { %v418_v57 = vpop.f32.mrf.mxu1 }
 0x214   :  { %v419_v60 = vadd.f32 %v845_v58, %v418_v57  ;;  %v483_v5 = vmax.f32 %v427_v62, 0.0 }
 0x215   :  { %v978_v59 = vpop.f32.mrf.mxu1 }
 0x216   :  { %v430_v61 = vadd.f32 %v978_v59, %v845_v58  ;;  %v481_v3 = vmax.f32 %v419_v60, 0.0 }
 0x217   :  { %v421_v63 = vpop.f32.mrf.mxu1 }
 0x218   :  { %v422_v0 = vadd.f32 %v845_v58, %v421_v63  ;;  %v484_v1 = vmax.f32 %v430_v61, 0.0 }
 0x219   :  { %v981_v2 = vpop.f32.mrf.mxu1 }
 0x21a   :  { %v482_v4 = vmax.f32 %v422_v0, 0.0  ;;  %v498_v8 = vpack.c.bf16 %v484_v1, %v483_v5  ;;  %v443_v12 = vadd.f32 %v981_v2, %v845_v58 }
 0x21b   :  { %v434_v6 = vpop.f32.mrf.mxu1 }
 0x21c   :  { %v497_v7 = vpack.c.bf16 %v482_v4, %v481_v3  ;;  %v435_v10 = vadd.f32 %v845_v58, %v434_v6  ;;  %v487_v19 = vmax.f32 %v443_v12, 0.0 }
 0x21d   :  { %v982_v9 = vpop.f32.mrf.mxu1 }
 0x21e   :  { %v446_v11 = vadd.f32 %v982_v9, %v845_v58  ;;  %1007 = vmatprep.mubr.bf16.mxu0 %v497_v7  ;;  %v485_v17 = vmax.f32 %v435_v10, 0.0 }
 0x21f   :  { %v437_v13 = vpop.f32.mrf.mxu1  ;;  %1008 = vmatmul.mubr.bf16.vlgmr.msra.gmra.mxu0 %v498_v8 }
 0x220   :  { %v438_v14 = vadd.f32 %v845_v58, %v437_v13  ;;  %v488_v15 = vmax.f32 %v446_v11, 0.0 }
 0x221   :  { %v985_v16 = vpop.f32.mrf.mxu1 }
 0x222   :  { %v486_v18 = vmax.f32 %v438_v14, 0.0  ;;  %v500_v22 = vpack.c.bf16 %v488_v15, %v487_v19  ;;  %v459_v26 = vadd.f32 %v985_v16, %v845_v58  ;;  %v1310_v16 = vld [vmem:[%s1336_s5] ss:$0 sm:$0xff]  ;;  %s1210_s5 = smov [#allocation10]  }
 0x223   :  { %v450_v20 = vpop.f32.mrf.mxu1  ;;  %s815_s18 = sshll.u32 %s1210_s5, 4  ;;  %s816_s18 = int_to_ptr.vmem [resolvable:$true] %s815_s18 }
 0x224   :  { %v499_v21 = vpack.c.bf16 %v486_v18, %v485_v17  ;;  %v451_v24 = vadd.f32 %v845_v58, %v450_v20  ;;  %v491_v33 = vmax.f32 %v459_v26, 0.0  ;;  %s1176_s19 = scalar_lea.vmem %s816_s18, 2048  ;;  %p1181_p7 = scmp.lt.s32.totalorder %s816_s18, %s816_s18 }
 0x225   :  { %v986_v23 = vpop.f32.mrf.mxu1  ;;  %p1177_p6 = scmp.ne.s32.totalorder %s816_s18, %s1176_s19  ;;  %p1182_p8 = scmp.lt.s32.totalorder %s1176_s19, %s1176_s19 }
 0x226   :  { %v462_v25 = vadd.f32 %v986_v23, %v845_v58  ;;  %1011 = vmatprep.mubr.bf16.mxu0 %v499_v21  ;;  %v489_v31 = vmax.f32 %v451_v24, 0.0 }
 0x227   :  { %v453_v27 = vpop.f32.mrf.mxu1  ;;  %1012 = vmatmul.mubr.bf16.gmra.mxu0 %v500_v22  ;;  %p1183_p9 = por %p1182_p8, %p1181_p7 }
 0x228   :  { %v454_v28 = vadd.f32 %v845_v58, %v453_v27  ;;  %v492_v29 = vmax.f32 %v462_v25, 0.0 }
 0x229   :  { %v989_v30 = vpop.f32.mrf.mxu1  ;;  %p1184_p10 = pnand %p1183_p9, %p1177_p6 }
 0x22a   :  { %v490_v32 = vmax.f32 %v454_v28, 0.0  ;;  %v502_v36 = vpack.c.bf16 %v492_v29, %v491_v33  ;;  %v475_v40 = vadd.f32 %v989_v30, %v845_v58 }
 0x22b   :  { %v466_v34 = vpop.f32.mrf.mxu1 }
 0x22c   :  { %v501_v35 = vpack.c.bf16 %v490_v32, %v489_v31  ;;  %v467_v38 = vadd.f32 %v845_v58, %v466_v34  ;;  %v495_v53 = vmax.f32 %v475_v40, 0.0 }
 0x22d   :  { %v990_v37 = vpop.f32.mrf.mxu1 }
 0x22e   :  { %v478_v39 = vadd.f32 %v990_v37, %v845_v58  ;;  %1015 = vmatprep.mubr.bf16.mxu0 %v501_v35  ;;  %v493_v44 = vmax.f32 %v467_v38, 0.0 }
 0x22f   :  { %v469_v41 = vpop.f32.mrf.mxu1  ;;  %1016 = vmatmul.mubr.bf16.gmra.mxu0 %v502_v36 }
 0x230   :  { %v470_v42 = vadd.f32 %v845_v58, %v469_v41  ;;  %v496_v43 = vmax.f32 %v478_v39, 0.0 }
 0x232   :  { %v494_v45 = vmax.f32 %v470_v42, 0.0  ;;  %v504_v55 = vpack.c.bf16 %v496_v43, %v495_v53 }
 0x234   :  { %v503_v54 = vpack.c.bf16 %v494_v45, %v493_v44 }
 0x236   :  { %1019 = vmatprep.mubr.bf16.mxu0 %v503_v54 }
 0x237   :  { %1020 = vmatmul.mubr.bf16.gmra.mxu0 %v504_v55 }
 0x2df   :  { %v1009_v56 = vpop.f32.mrf.mxu0 }
 0x2e1   :  { %v603_v57 = vpop.f32.mrf.mxu0 }
 0x2e3   :  { %v1010_v59 = vpop.f32.mrf.mxu0 }
 0x2e4   :  { %v667_v14 = vpack.c.bf16 %v1010_v59, %v1009_v56 }
 0x2e5   :  { %v606_v60 = vpop.f32.mrf.mxu0 }
 0x2e6   :  { %v666_v15 = vpack.c.bf16 %v606_v60, %v603_v57 }
 0x2e7   :  { %v1013_v61 = vpop.f32.mrf.mxu0 }
 0x2e9   :  { %v619_v62 = vpop.f32.mrf.mxu0 }
 0x2eb   :  { %v1014_v63 = vpop.f32.mrf.mxu0 }
 0x2ec   :  { %v669_v12 = vpack.c.bf16 %v1014_v63, %v1013_v61 }
 0x2ed   :  { %v622_v0 = vpop.f32.mrf.mxu0 }
 0x2ee   :  { %v668_v13 = vpack.c.bf16 %v622_v0, %v619_v62 }
 0x2ef   :  { %v1017_v1 = vpop.f32.mrf.mxu0 }
 0x2f1   :  { %v635_v2 = vpop.f32.mrf.mxu0 }
 0x2f3   :  { %v1018_v3 = vpop.f32.mrf.mxu0 }
 0x2f4   :  { %v671_v10 = vpack.c.bf16 %v1018_v3, %v1017_v1 }
 0x2f5   :  { %v638_v58 = vpop.f32.mrf.mxu0 }
 0x2f6   :  { %v670_v11 = vpack.c.bf16 %v638_v58, %v635_v2 }
 0x2f7   :  { %v1021_v4 = vpop.f32.mrf.mxu0 }
 0x2f9   :  { %v651_v5 = vpop.f32.mrf.mxu0 }
 0x2fb   :  { %v1022_v6 = vpop.f32.mrf.mxu0 }
 0x2fc   :  { %v673_v7 = vpack.c.bf16 %v1022_v6, %v1021_v4 }
 0x2fd   :  { %v654_v8 = vpop.f32.mrf.mxu0 }
 0x2fe   :  { %v672_v9 = vpack.c.bf16 %v654_v8, %v651_v5  ;;  %1023 = vmatprep.subr.bf16.mxu1 %v673_v7 }
 0x2ff   :  { %1024 = vmatpush3.bf16.msra.mxu1 %v673_v7 }
 0x300   :  { %1025 = vmatprep.subr.bf16.mxu1 %v672_v9 }
 0x303   :  { %1026 = vmatpush3.bf16.msra.mxu1 %v672_v9 }
 0x304   :  { %1027 = vmatprep.subr.bf16.mxu1 %v671_v10 }
 0x307   :  { %1028 = vmatpush3.bf16.msra.mxu1 %v671_v10 }
 0x308   :  { %1029 = vmatprep.subr.bf16.mxu1 %v670_v11 }
 0x30b   :  { %1030 = vmatpush3.bf16.msra.mxu1 %v670_v11 }
 0x30c   :  { %1031 = vmatprep.subr.bf16.mxu1 %v669_v12 }
 0x30f   :  { %1032 = vmatpush3.bf16.msra.mxu1 %v669_v12 }
 0x310   :  { %1033 = vmatprep.subr.bf16.mxu1 %v668_v13 }
 0x313   :  { %1034 = vmatpush3.bf16.msra.mxu1 %v668_v13 }
 0x314   :  { %1035 = vmatprep.subr.bf16.mxu1 %v667_v14 }
 0x317   :  { %1036 = vmatpush3.bf16.msra.mxu1 %v667_v14 }
 0x318   :  { %1037 = vmatprep.subr.bf16.mxu1 %v666_v15 }
 0x31b   :  { %1038 = vmatpush3.bf16.msra.mxu1 %v666_v15 }
 0x31e   :  { %1040 = vmatmul.mubr.bf16.vlgmr.msra.gmra.mxu1 %v1275_v46 }
 0x31f   :  { %1043 = vmatprep.mubr.bf16.mxu1 %v1277_v47 }
 0x326   :  { %1044 = vmatmul.mubr.bf16.gmra.mxu1 %v1281_v48 }
 0x327   :  { %1047 = vmatprep.mubr.bf16.mxu1 %v1283_v49 }
 0x32e   :  { %1048 = vmatmul.mubr.bf16.gmra.mxu1 %v1287_v50 }
 0x32f   :  { %1051 = vmatprep.mubr.bf16.mxu1 %v1289_v51 }
 0x336   :  { %1052 = vmatmul.mubr.bf16.gmra.mxu1 %v1293_v52 }
 0x3de   :  { %v1041_v17 = vpop.f32.mrf.mxu1 }
 0x3df   :  { %v724_v46 = vadd.f32 %v1041_v17, %v1310_v16 }
 0x3e0   :  { %v715_v18 = vpop.f32.mrf.mxu1 }
 0x3e1   :  { %v780_v47 = vmax.f32 %v724_v46, 0.0  ;;  %v716_v48 = vadd.f32 %v1310_v16, %v715_v18 }
 0x3e2   :  { %v1042_v19 = vpop.f32.mrf.mxu1 }
 0x3e3   :  { %796 = vst [vmem:[#allocation10 + $0x10] sm:$0xff] %v780_v47  ;;  %v778_v49 = vmax.f32 %v716_v48, 0.0  ;;  %v727_v50 = vadd.f32 %v1042_v19, %v1310_v16 }
 0x3e4   :  { %v718_v51 = vpop.f32.mrf.mxu1 }
 0x3e5   :  { %794 = vst [vmem:[#allocation10] sm:$0xff] %v778_v49  ;;  %v781_v52 = vmax.f32 %v727_v50, 0.0  ;;  %v719_v20 = vadd.f32 %v1310_v16, %v718_v51 }
 0x3e6   :  { %v1045_v21 = vpop.f32.mrf.mxu1 }
 0x3e7   :  { %797 = vst [vmem:[#allocation10 + $0x18] sm:$0xff] %v781_v52  ;;  %v779_v22 = vmax.f32 %v719_v20, 0.0  ;;  %v740_v23 = vadd.f32 %v1045_v21, %v1310_v16 }
 0x3e8   :  { %v731_v24 = vpop.f32.mrf.mxu1 }
 0x3e9   :  { %795 = vst [vmem:[#allocation10 + $0x8] sm:$0xff] %v779_v22  ;;  %v784_v25 = vmax.f32 %v740_v23, 0.0  ;;  %v732_v26 = vadd.f32 %v1310_v16, %v731_v24 }
 0x3ea   :  { %v1046_v27 = vpop.f32.mrf.mxu1 }
 0x3eb   :  { %800 = vst [vmem:[#allocation10 + $0x30] sm:$0xff] %v784_v25  ;;  %v782_v28 = vmax.f32 %v732_v26, 0.0  ;;  %v743_v29 = vadd.f32 %v1046_v27, %v1310_v16 }
 0x3ec   :  { %v734_v30 = vpop.f32.mrf.mxu1 }
 0x3ed   :  { %798 = vst [vmem:[#allocation10 + $0x20] sm:$0xff] %v782_v28  ;;  %v785_v31 = vmax.f32 %v743_v29, 0.0  ;;  %v735_v32 = vadd.f32 %v1310_v16, %v734_v30 }
 0x3ee   :  { %v1049_v33 = vpop.f32.mrf.mxu1 }
 0x3ef   :  { %801 = vst [vmem:[#allocation10 + $0x38] sm:$0xff] %v785_v31  ;;  %v783_v34 = vmax.f32 %v735_v32, 0.0  ;;  %v756_v35 = vadd.f32 %v1049_v33, %v1310_v16 }
 0x3f0   :  { %v747_v36 = vpop.f32.mrf.mxu1 }
 0x3f1   :  { %799 = vst [vmem:[#allocation10 + $0x28] sm:$0xff] %v783_v34  ;;  %v788_v37 = vmax.f32 %v756_v35, 0.0  ;;  %v748_v38 = vadd.f32 %v1310_v16, %v747_v36 }
 0x3f2   :  { %v1050_v39 = vpop.f32.mrf.mxu1 }
 0x3f3   :  { %804 = vst [vmem:[#allocation10 + $0x50] sm:$0xff] %v788_v37  ;;  %v786_v40 = vmax.f32 %v748_v38, 0.0  ;;  %v759_v41 = vadd.f32 %v1050_v39, %v1310_v16 }
 0x3f4   :  { %v750_v42 = vpop.f32.mrf.mxu1 }
 0x3f5   :  { %802 = vst [vmem:[#allocation10 + $0x40] sm:$0xff] %v786_v40  ;;  %v789_v43 = vmax.f32 %v759_v41, 0.0  ;;  %v751_v44 = vadd.f32 %v1310_v16, %v750_v42 }
 0x3f6   :  { %v1053_v45 = vpop.f32.mrf.mxu1 }
 0x3f7   :  { %805 = vst [vmem:[#allocation10 + $0x58] sm:$0xff] %v789_v43  ;;  %v787_v53 = vmax.f32 %v751_v44, 0.0  ;;  %v772_v54 = vadd.f32 %v1053_v45, %v1310_v16 }
 0x3f8   :  { %v763_v55 = vpop.f32.mrf.mxu1 }
 0x3f9   :  { %803 = vst [vmem:[#allocation10 + $0x48] sm:$0xff] %v787_v53  ;;  %v792_v56 = vmax.f32 %v772_v54, 0.0  ;;  %v764_v57 = vadd.f32 %v1310_v16, %v763_v55 }
 0x3fa   :  { %v1054_v59 = vpop.f32.mrf.mxu1 }
 0x3fb   :  { %808 = vst [vmem:[#allocation10 + $0x70] sm:$0xff] %v792_v56  ;;  %v790_v60 = vmax.f32 %v764_v57, 0.0  ;;  %v775_v61 = vadd.f32 %v1054_v59, %v1310_v16 }
 0x3fc   :  { %v766_v62 = vpop.f32.mrf.mxu1 }
 0x3fd   :  { %806 = vst [vmem:[#allocation10 + $0x60] sm:$0xff] %v790_v60  ;;  %v793_v63 = vmax.f32 %v775_v61, 0.0  ;;  %v767_v0 = vadd.f32 %v1310_v16, %v766_v62 }
 0x3ff   :  { %809 = vst [vmem:[#allocation10 + $0x78] sm:$0xff] %v793_v63  ;;  %v791_v1 = vmax.f32 %v767_v0, 0.0 }
 0x401   :  { %807 = vst [vmem:[#allocation10 + $0x68] sm:$0xff] %v791_v1 }
 0x402   :  { %1187 = shalt.err (!%p1184_p10)
}
 0x403   :  { %s1211_s20 = smov 128   ;;  %s1212_s21 = smov 8  }
 0x404   :  { %821 = dma.vmem_to_hbm [thread:$0]  %s816_s18, 2048, %s1337_s6, [#allocation4], %s1211_s20, %s1211_s20, %s1212_s21  }
 0x405   :  { %1202 = dma.done.wait [#allocation4], 2048  }
 0x406   :  { %1203 = vsyncadd [#allocation4], 4294965248 }
 0x407   :  { %825 = vsyncpa [#allocation3], 1 }
 0x408   :  { %826 = vsyncpa [#allocation6], 1 }
 0x409   :  { %827 = vsyncpa [#allocation9], 1 }
 0x40a   :  { %828 = vsyncpa [#allocation4], 1 }

</bundles_post_ra>
